<compile_context>
chip_gen: v5e
topology: v5e:2x2
jax: 0.10.0
libtpu: 0.0.40
codegen_flags: <defaults>
</compile_context>

<pallas_src>
import jax
import jax.numpy as jnp
from jax.experimental import pallas as pl
from jax.experimental.pallas import tpu as pltpu


def _res_layer_pool_kernel(p_ref, w_ref, o_ref):
    # p_ref: (1, th, Wo, 9*Cin)  im2col patches (tap-major: ki*3+kj, then Cin)
    # w_ref: (9*Cin, Cout)       conv weights, resident across the whole grid
    # o_ref: (1, th, Wo, Cout)   conv(x) + avgpool(x)
    _, th, Wo, K = p_ref.shape
    Cout = o_ref.shape[-1]
    Cin = K // 9

    pm = p_ref[0].reshape(th * Wo, K)          # leading-dim merge only (lane dim kept)

    # --- single im2col matmul (K = 9*Cin) on the MXU, f32 accumulation ---
    conv = jnp.dot(pm, w_ref[...], preferred_element_type=jnp.float32)

    # --- 2x2 / stride-2 average pool == mean of taps (1,1),(1,2),(2,1),(2,2),
    #     i.e. channel slices 4,5,7,8 of the patch matrix (VPU adds only) ---
    pool = (pm[:, 4 * Cin:5 * Cin] + pm[:, 5 * Cin:6 * Cin]
            + pm[:, 7 * Cin:8 * Cin] + pm[:, 8 * Cin:9 * Cin]) * 0.25

    # residual add (requires Cin == Cout, as in the PyTorch module)
    o_ref[0] = (conv + pool).reshape(th, Wo, Cout).astype(o_ref.dtype)


def _pick_tile_h(Ho, Wo, Cin, Cout, itemsize, budget_bytes=6 << 20):
    # double-buffered (input patches + output) rows per pipeline step must fit
    # comfortably in scoped VMEM (budget sized for v7x's smaller VMEM).
    bytes_per_row = 2 * Wo * (9 * Cin + Cout) * itemsize
    max_rows = max(1, budget_bytes // max(bytes_per_row, 1))
    tile = 1
    for d in range(1, Ho + 1):
        if Ho % d == 0 and d <= max_rows:
            tile = d
    return tile


def res_layer_pool(x_nchw, w_oihw, tile_h=None):
    """x_nchw: (N, C, H, W); w_oihw: (Cout, Cin, 3, 3). Returns NCHW output."""
    N, C, H, W = x_nchw.shape
    Cout, Cin, kh, kw = w_oihw.shape
    assert (kh, kw) == (3, 3) and Cin == C
    assert Cout == C, "residual add requires inchannel == outchannel"
    assert H % 2 == 0 and W % 2 == 0
    Ho, Wo = H // 2, W // 2

    itemsize = jnp.dtype(x_nchw.dtype).itemsize
    if tile_h is None:
        tile_h = _pick_tile_h(Ho, Wo, Cin, Cout, itemsize)
    assert Ho % tile_h == 0

    # --- wrapper pre-pack: zero-pad + 9 stride-2 phase views -> im2col patches ---
    x_nhwc = jnp.transpose(x_nchw, (0, 2, 3, 1))                    # NHWC
    xp = jnp.pad(x_nhwc, ((0, 0), (1, 1), (1, 1), (0, 0)))          # conv padding=1
    taps = [xp[:, ki:ki + H:2, kj:kj + W:2, :]                      # (N, Ho, Wo, C) each
            for ki in range(3) for kj in range(3)]
    patches = jnp.concatenate(taps, axis=-1)                        # (N, Ho, Wo, 9*C)

    # weight reshaped once in the wrapper: OIHW -> HWIO -> (9*Cin, Cout)
    w9 = jnp.transpose(w_oihw, (2, 3, 1, 0)).reshape(9 * Cin, Cout)

    cost = pl.CostEstimate(
        flops=2 * N * Ho * Wo * 9 * Cin * Cout + 5 * N * Ho * Wo * Cout,
        transcendentals=0,
        bytes_accessed=(patches.size + w9.size + N * Ho * Wo * Cout) * itemsize,
    )

    out_nhwc = pl.pallas_call(
        _res_layer_pool_kernel,
        out_shape=jax.ShapeDtypeStruct((N, Ho, Wo, Cout), x_nchw.dtype),
        grid=(N, Ho // tile_h),
        in_specs=[
            pl.BlockSpec((1, tile_h, Wo, 9 * Cin), lambda n, r: (n, r, 0, 0)),
            pl.BlockSpec((9 * Cin, Cout), lambda n, r: (0, 0)),     # weights stay resident
        ],
        out_specs=pl.BlockSpec((1, tile_h, Wo, Cout), lambda n, r: (n, r, 0, 0)),
        compiler_params=pltpu.CompilerParams(
            dimension_semantics=("parallel", "parallel"),
            vmem_limit_bytes=32 * 1024 * 1024,
        ),
        cost_estimate=cost,
    )(patches, w9)

    return jnp.transpose(out_nhwc, (0, 3, 1, 2))                    # back to NCHW


if __name__ == "__main__":
    key = jax.random.PRNGKey(0)
    kx, kw = jax.random.split(key)

    N, C, H, W = 2, 4, 16, 16          # inchannel == outchannel == 4
    x = jax.random.normal(kx, (N, C, H, W), dtype=jnp.float32)
    w = jax.random.normal(kw, (C, C, 3, 3), dtype=jnp.float32) * 0.1

    # tile_h=4 exercises the multi-step row-tiled grid: grid = (N, Ho//4) = (2, 2)
    out = jax.block_until_ready(res_layer_pool(x, w, tile_h=4))

    # pure-JAX reference for sanity
    conv_ref = jax.lax.conv_general_dilated(
        x, w, window_strides=(2, 2), padding=((1, 1), (1, 1)),
        dimension_numbers=("NCHW", "OIHW", "NCHW"))
    pool_ref = jnp.mean(x.reshape(N, C, H // 2, 2, W // 2, 2), axis=(3, 5))
    ref = conv_ref + pool_ref

    assert out.shape == (N, C, H // 2, W // 2)
    assert jnp.allclose(out, ref, atol=1e-4, rtol=1e-4), "mismatch vs reference"
    print("KERNEL_OK")
</pallas_src>

<mosaic_0001>
module attributes {stable_mosaic.version = 11 : i64} {
  func.func @_res_layer_pool_kernel(%arg0: i32, %arg1: i32, %arg2: memref<1x4x8x36xf32, #tpu.memory_space<vmem>>, %arg3: memref<36x4xf32, #tpu.memory_space<vmem>>, %arg4: memref<1x4x8x4xf32, #tpu.memory_space<vmem>>) attributes {dimension_semantics = [#tpu.dimension_semantics<parallel>, #tpu.dimension_semantics<parallel>], iteration_bounds = array<i64: 2, 2>, scalar_prefetch = 0 : i64, scratch_operands = 0 : i64, tpu.core_type = #tpu.core_type<tc>, window_params = [{transform_indices = @transform_0, window_bounds = array<i64: 1, 4, 8, 36>}, {pipeline_mode = #tpu.pipeline_mode<synchronous>, transform_indices = @transform_1, window_bounds = array<i64: 36, 4>}, {transform_indices = @transform_2, window_bounds = array<i64: 1, 4, 8, 4>}]} {
    %c0 = arith.constant 0 : index
    %c0_0 = arith.constant 0 : index
    %c0_1 = arith.constant 0 : index
    %c0_2 = arith.constant 0 : index
    %0 = vector.load %arg2[%c0, %c0_0, %c0_1, %c0_2] : memref<1x4x8x36xf32, #tpu.memory_space<vmem>>, vector<1x4x8x36xf32>
    %1 = vector.shape_cast %0 : vector<1x4x8x36xf32> to vector<4x8x36xf32>
    %2 = vector.shape_cast %1 : vector<4x8x36xf32> to vector<32x36xf32>
    %c0_3 = arith.constant 0 : index
    %c0_4 = arith.constant 0 : index
    %3 = vector.load %arg3[%c0_3, %c0_4] : memref<36x4xf32, #tpu.memory_space<vmem>>, vector<36x4xf32>
    %cst = arith.constant dense<0.000000e+00> : vector<32x4xf32>
    %4 = tpu.matmul %2, %3, %cst {dimension_numbers = #tpu.dot_dimension_numbers<[1], [0], [0], [1], [0, 0, 1, 1], [], []>} : vector<32x36xf32>, vector<36x4xf32>, vector<32x4xf32> -> vector<32x4xf32>
    %5 = vector.extract_strided_slice %2 {offsets = [0, 16], sizes = [32, 4], strides = [1, 1]} : vector<32x36xf32> to vector<32x4xf32>
    %6 = vector.extract_strided_slice %2 {offsets = [0, 20], sizes = [32, 4], strides = [1, 1]} : vector<32x36xf32> to vector<32x4xf32>
    %7 = arith.addf %5, %6 : vector<32x4xf32>
    %8 = vector.extract_strided_slice %2 {offsets = [0, 28], sizes = [32, 4], strides = [1, 1]} : vector<32x36xf32> to vector<32x4xf32>
    %9 = arith.addf %7, %8 : vector<32x4xf32>
    %10 = vector.extract_strided_slice %2 {offsets = [0, 32], sizes = [32, 4], strides = [1, 1]} : vector<32x36xf32> to vector<32x4xf32>
    %11 = arith.addf %9, %10 : vector<32x4xf32>
    %cst_5 = arith.constant 2.500000e-01 : f32
    %12 = vector.broadcast %cst_5 : f32 to vector<32x4xf32>
    %13 = arith.mulf %11, %12 : vector<32x4xf32>
    %14 = arith.addf %4, %13 : vector<32x4xf32>
    %15 = vector.shape_cast %14 : vector<32x4xf32> to vector<4x8x4xf32>
    %c0_6 = arith.constant 0 : index
    %c0_7 = arith.constant 0 : index
    %c0_8 = arith.constant 0 : index
    %c0_9 = arith.constant 0 : index
    %16 = vector.load %arg4[%c0_6, %c0_7, %c0_8, %c0_9] : memref<1x4x8x4xf32, #tpu.memory_space<vmem>>, vector<1x4x8x4xf32>
    %17 = vector.shape_cast %16 : vector<1x4x8x4xf32> to vector<4x8x4xf32>
    %18 = vector.shape_cast %15 : vector<4x8x4xf32> to vector<1x4x8x4xf32>
    tpu.vector_store %arg4[%c0_6, %c0_7, %c0_8, %c0_9], %18 {strides = array<i32>} : memref<1x4x8x4xf32, #tpu.memory_space<vmem>>, vector<1x4x8x4xf32>,
    return
  }
  func.func @transform_0(%arg0: i32, %arg1: i32) -> (i32, i32, i32, i32) {
    %c0_i32 = arith.constant 0 : i32
    %c0_i32_0 = arith.constant 0 : i32
    %c0_i32_1 = arith.constant 0 : i32
    return %arg0, %arg1, %c0_i32, %c0_i32_0 : i32, i32, i32, i32
  }
  func.func @transform_1(%arg0: i32, %arg1: i32) -> (i32, i32) {
    %c0_i32 = arith.constant 0 : i32
    %c0_i32_0 = arith.constant 0 : i32
    %c0_i32_1 = arith.constant 0 : i32
    return %c0_i32, %c0_i32_0 : i32, i32
  }
  func.func @transform_2(%arg0: i32, %arg1: i32) -> (i32, i32, i32, i32) {
    %c0_i32 = arith.constant 0 : i32
    %c0_i32_0 = arith.constant 0 : i32
    %c0_i32_1 = arith.constant 0 : i32
    return %arg0, %arg1, %c0_i32, %c0_i32_0 : i32, i32, i32, i32
  }
}

</mosaic_0001>

<bundles_post_ra>
// kernel: tpu_custom_call.1
= control target key start
LH: loop header
LB: loop body
LE: loop exit
PB: predicated region body
PF: predicated region fallthrough
CT: control target
= control target key end

     0   :  { %7 = vsyncpa [#allocation3], 0  ;;  %s797_s0 = inlined_call_operand.hbm [shape: f32[2,8,8,36], index: 0, kind: input, shape index: {}]   ;;  %s798_s1 = inlined_call_operand.vmem [shape: f32[36,4], index: 1, kind: input, shape index: {}]   ;;  %s799_s2 = inlined_call_operand.vmem [shape: f32[2,8,8,4], index: 2, kind: output, shape index: {}]  }
   0x1   :  { %9 = vsyncpa [#allocation3 + $0x1], 0  ;;  %s649_s9 = smov 0   ;;  %s651_s10 = smov 0  }
   0x2   :  { %s653_s11 = smov 0   ;;  %s655_s12 = smov 0  }
   0x3   :  { %s657_s13 = smov 0   ;;  %s659_s14 = smov 0  }
   0x4   :  { %s661_s15 = smov 0   ;;  %s663_s16 = smov 0  }
   0x5 LB: > { %s420_s17 = sadd.s32 4294967295, %s627_s16   ;;  %s24_s18 = sadd.s32 1, %s619_s14  ;;  %s627_s16 = sphi %s663_s16, %s15_s16   ;;  %s623_s15 = sphi %s661_s15, %s808_s15   ;;  %s619_s14 = sphi %s659_s14, %s807_s14   ;;  %s615_s13 = sphi %s657_s13, %s806_s13   ;;  %s611_s12 = sphi %s655_s12, %s805_s12   ;;  %s607_s11 = sphi %s653_s11, %s804_s11   ;;  %s603_s10 = sphi %s651_s10, %s803_s10   ;;  %s599_s9 = sphi %s649_s9, %s802_s9  }
   0x6   : > { %p25_p0 = scmp.ge.s32.totalorder %s24_s18, 2  ;;  %s27_s19 = sadd.s32 1, %s623_s15 }
   0x7   : > { %s36_s20 = sadd.s32 1, %s607_s11  ;;  %p43_p1 = scmp.ne.s32.totalorder %s607_s11, %s603_s10 }
   0x8   : > { %s810_s18 = smov (%p25_p0, %s24_s18), 0  ;;  %s812_s19 = smov (!%p25_p0, %s27_s19), %s623_s15 }
   0x9   : > { %s32_s21 = ssub.s32 %s619_s14, %s810_s18  ;;  %p44_p2 = scmp.eq.s32.totalorder %s627_s16, 0 }
   0xa   : > { %p29_p3 = scmp.ge.s32.totalorder %s812_s19, 2  ;;  %p49_p4 = scmp.ne.s32.totalorder %s603_s10, %s599_s9 }
   0xb   : > { %p700_p5 = por %p44_p2, %p43_p1  ;;  %p50_p6 = scmp.eq.s32.totalorder %s420_s17, 0 }
   0xc   : > { %s814_s19 = smov (%p29_p3, %s812_s19), 0  ;;  %p461_p8 = scmp.lt.s32.totalorder %s627_s16, 4 }
   0xd   : > { %p706_p7 = por %p50_p6, %p49_p4  ;;  %s31_s24 = ssub.s32 %s623_s15, %s814_s19 }
   0xe   : > { %s33_s25 = sor.u32 %s32_s21, %s31_s24  ;;  %s125_s26 = sand.u32 1, %s607_s11  }
   0xf   : > { %p34_p9 = scmp.eq.s32.totalorder %s33_s25, 0  ;;  %s424_s27 = sshll.u32 %s125_s26, 5 }
  0x10   : > { %s425_s28 = sshll.u32 %s619_s14, 2  ;;  %s426_s30 = sshll.u32 %s623_s15, 3 }
  0x11   : > { %s716_s29 = scalar_select %p34_p9, %s607_s11, %s36_s20  }
  0x12   : > { %s134_s3 = sadd.s32 %s426_s30, %s425_s28  ;;  %s129_s4 = scalar_lea.vmem [#allocation2], %s424_s27 }
  0x13   : > { %s139_s5 = sshll.u32 %s129_s4, 4  ;;  %s427_s6 = sshll.u32 %s134_s3, 3  ;;  %s140_s5 = int_to_ptr.vmem [resolvable:$true] %s139_s5 }
  0x14   : > { %s136_s9 = scalar_lea.hbm %s797_s0, %s427_s6  ;;  %p458_p10 = pnand %p461_p8, %p700_p5 }
  0x15   : > { %s137_s17 = sshll.u32 %s136_s9, 4  ;;  %p428_p11 = scmp.ge.s32.totalorder %s627_s16, 1  ;;  %s138_s17 = int_to_ptr.hbm [resolvable:$true] %s137_s17 }
  0x16   : > { %s126_s21 = scalar_lea.sflag [#allocation3], %s125_s26  ;;  %s629_s20 = smov 128  }
  0x17   : > { %s630_s24 = smov 8   ;;  %p147_p12 = scmp.lt.s32.totalorder %s627_s16, 5 }
  0x18   : > { %460 = dma.hbm_to_vmem [thread:$0]  (!%p458_p10), %s138_s17, 512, %s140_s5, %s126_s21, %s629_s20, %s629_s20, %s630_s24  }
  0x19   : > { %p148_p13 = pnand %p428_p11, %p147_p12 }
  0x1a   : > { %s153_s25 = sand.u32 (!%p148_p13), 1, %s603_s10  }
  0x1b   : > { %151 = sbr.rel (%p148_p13) target bundleno = 295 (0x127), region = 28  ;;  %s429_s27 = sshll.u32 (!%p148_p13), %s153_s25, 5 }
  0x1c   : > { %s154_s28 = scalar_lea.sflag (!%p148_p13), [#allocation3], %s153_s25  ;;  %s157_s30 = scalar_lea.vmem (!%p148_p13), [#allocation2], %s429_s27 }
  0x20   : > { %594 = dma.done.wait (%p706_p7), %s154_s28, 512  }
  0x21   : > { %596 = vsyncadd (%p706_p7), %s154_s28, 4294966784  ;;  %vm284_vm0 = vcmask 1043456   ;;  %v733_v0 = vld [vmem:[%s157_s30 + $0x10] sm:$0xff]  ;;  %v194_v1 = vld [vmem:[%s157_s30] sm:$0xff]  ;;  %s631_s22 = smov 124   ;;  %s632_s4 = smov 116  }
  0x22   : > { %211 = vrot.lane.b32.xlu1 %v733_v0, %s631_s22  ;;  %207 = vrot.lane.b32.xlu0 %v194_v1, %s631_s22  ;;  %v202_v2 = vld [vmem:[%s798_s1 + $0x20] sm:$0xf]  ;;  %v201_v3 = vld [vmem:[%s798_s1 + $0x18] sm:$0xff]  ;;  %vm275_vm1 = vcmask 293888   ;;  %s633_s20 = smov 112   ;;  %s430_s24 = sshll.u32 %s611_s12, 2 }
  0x23   : > { %223 = vrot.lane.b32.xlu2 %v194_v1, %s632_s4  ;;  %441 = vmatpush.msk.msra.mxu2 %vm284_vm0, %v202_v2  ;;  %v200_v4 = vld [vmem:[%s798_s1 + $0x10] sm:$0xff]  ;;  %v199_v5 = vld [vmem:[%s798_s1 + $0x8] sm:$0xff]  ;;  %v197_v6 = vld [vmem:[%s157_s30 + $0x18] sm:$0xff]  ;;  %p185_p0 = scmp.lt.s32.totalorder %s615_s13, 1  ;;  %p187_p1 = scmp.lt.s32.totalorder %s430_s24, 7  ;;  %vm317_vm2 = vcmask 31744  }
  0x24   : > { %433 = vmatpush.msk.msra.mxu0 %vm284_vm0, %v202_v2  ;;  %442 = vmatpush.msk.msra.mxu3 %vm284_vm0, %v202_v2  ;;  %v195_v7 = vld [vmem:[%s157_s30 + $0x8] sm:$0xff]  ;;  %v198_v8 = vld [vmem:[%s798_s1] sm:$0xff] }
  0x25   : > { %444 = vmatpush.msra.mxu2 %v201_v3  ;;  %440 = vmatpush.msk.msra.mxu1 %vm284_vm0, %v202_v2  ;;  %s816_s13 = smov (!%p185_p0, %s615_s13), 1  ;;  %s818_s24 = smov (!%p187_p1, %s430_s24), 7 }
  0x26   : > { %300 = vmatpush.msra.mxu0 %v201_v3  ;;  %445 = vmatpush.msra.mxu3 %v201_v3  ;;  %s431_s25 = sshll.u32 %s816_s13, 3 }
  0x27   : > { %447 = vmatpush.msra.mxu2 %v200_v4  ;;  %443 = vmatpush.msra.mxu1 %v201_v3  ;;  %s190_s27 = sadd.s32 %s431_s25, %s818_s24 }
  0x28   : > { %301 = vmatpush.msra.mxu0 %v200_v4  ;;  %448 = vmatpush.msra.mxu3 %v200_v4  ;;  %s432_s28 = sshll.u32 %s190_s27, 3 }
  0x29   : > { %450 = vmatpush.msra.mxu2 %v199_v5  ;;  %446 = vmatpush.msra.mxu1 %v200_v4  ;;  %s192_s26 = scalar_lea.vmem %s799_s2, %s432_s28 }
  0x2a   : > { %213 = vrot.lane.b32.xlu1 %v197_v6, %s631_s22  ;;  %209 = vrot.lane.b32.xlu0 %v195_v7, %s631_s22 }
  0x2b   : > { %225 = vrot.lane.b32.xlu2 %v195_v7, %s632_s4  ;;  %453 = vmatpush.msra.mxu2 %v198_v8 }
  0x2c   : > { %436 = vmatmul.msk.f32.vlgmr.msra.gmra.mxu2 %vm275_vm1, %v733_v0  ;;  %302 = vmatpush.msra.mxu0 %v199_v5 }
  0x2d   : > { %451 = vmatpush.msra.mxu3 %v199_v5  ;;  %449 = vmatpush.msra.mxu1 %v199_v5 }
  0x2e   : > { %303 = vmatpush.msra.mxu0 %v198_v8 }
  0x2f   : > { %434 = vmatmul.msk.f32.vlgmr.msra.gmra.mxu0 %vm275_vm1, %v194_v1  ;;  %454 = vmatpush.msra.mxu3 %v198_v8 }
  0x30   : > { %437 = vmatmul.msk.f32.vlgmr.msra.gmra.mxu3 %vm275_vm1, %v197_v6  ;;  %452 = vmatpush.msra.mxu1 %v198_v8 }
  0x31   : > { %435 = vmatmul.msk.f32.vlgmr.msra.gmra.mxu1 %vm275_vm1, %v195_v7 }
  0x32   : > { %229 = vrot.lane.b32.xlu1 %v197_v6, %s632_s4  ;;  %227 = vrot.lane.b32.xlu0 %v733_v0, %s632_s4 }
  0x33   : > { %239 = vrot.lane.b32.xlu2 %v194_v1, %s633_s20 }
  0x3a   : > { %243 = vrot.lane.b32.xlu1 %v733_v0, %s633_s20  ;;  %241 = vrot.lane.b32.xlu0 %v195_v7, %s633_s20 }
  0x3b   : > { %245 = vrot.lane.b32.xlu2 %v197_v6, %s633_s20 }
  0x7d   : > { %v224_v9 = vpop.permute.xlu2 %223 }
  0x85   : > { %v226_v10 = vpop.permute.xlu2 %225 }
  0x8d   : > { %v240_v14 = vpop.permute.xlu2 %239 }
  0x94   : > { %v212_v11 = vpop.permute.xlu1 %211  ;;  %v208_v12 = vpop.permute.xlu0 %207 }
  0x95   : > { %v219_v13 = vadd.f32 %v208_v12, %v194_v1  ;;  %v246_v21 = vpop.permute.xlu2 %245  ;;  %v221_v27 = vadd.f32 %v212_v11, %v733_v0 }
  0x97   : > { %v235_v15 = vadd.f32 %v224_v9, %v219_v13 }
  0x99   : > { %v251_v16 = vadd.f32 %v240_v14, %v235_v15 }
  0x9b   : > { %v255_v17 = vmul.f32 0.25, %v251_v16 }
  0x9c   : > { %v214_v18 = vpop.permute.xlu1 %213  ;;  %v210_v19 = vpop.permute.xlu0 %209 }
  0x9d   : > { %263 = vrot.lane.b32.xlu0 %v255_v17, %s633_s20  ;;  %v222_v20 = vadd.f32 %v214_v18, %v197_v6  ;;  %v220_v25 = vadd.f32 %v210_v19, %v195_v7 }
  0x9f   : > { %v236_v30 = vadd.f32 %v226_v10, %v220_v25 }
  0xa4   : > { %v230_v22 = vpop.permute.xlu1 %229  ;;  %v228_v23 = vpop.permute.xlu0 %227 }
  0xa5   : > { %v238_v24 = vadd.f32 %v230_v22, %v222_v20  ;;  %v237_v29 = vadd.f32 %v228_v23, %v221_v27 }
  0xa7   : > { %v254_v26 = vadd.f32 %v246_v21, %v238_v24 }
  0xa9   : > { %v258_v28 = vmul.f32 0.25, %v254_v26 }
  0xab   : > { %269 = vrot.lane.b32.xlu0 %v258_v28, %s633_s20 }
  0xac   : > { %v244_v31 = vpop.permute.xlu1 %243  ;;  %v242_v32 = vpop.permute.xlu0 %241 }
  0xad   : > { %v253_v33 = vadd.f32 %v244_v31, %v237_v29  ;;  %v252_v34 = vadd.f32 %v242_v32, %v236_v30  ;;  %v305_v40 = vpop.f32.mrf.mxu0 }
  0xae   : > { %v308_v46 = vpop.f32.mrf.mxu1 }
  0xaf   : > { %v257_v35 = vmul.f32 0.25, %v253_v33  ;;  %v256_v36 = vmul.f32 0.25, %v252_v34  ;;  %v311_v37 = vpop.f32.mrf.mxu2 }
  0xb1   : > { %267 = vrot.lane.b32.xlu2 %v257_v35, %s633_s20  ;;  %265 = vrot.lane.b32.xlu1 %v256_v36, %s633_s20 }
  0xb3   : > { %v314_v43 = vpop.f32.mrf.mxu3 }
 0x10b   : > { %v268_v38 = vpop.permute.xlu2 %267 }
 0x10c   : > { %v312_v39 = vadd.f32 %v311_v37, %v268_v38 }
 0x10e   : > { %320 = vst.msk [vmem:[%s192_s26 + $0x10] sm:$0xff] %vm317_vm2, %v312_v39 }
 0x10f   : > { %v264_v41 = vpop.permute.xlu0 %263 }
 0x110   : > { %v306_v42 = vadd.f32 %v305_v40, %v264_v41 }
 0x112   : > { %318 = vst.msk [vmem:[%s192_s26] sm:$0xff] %vm317_vm2, %v306_v42 }
 0x11d   : > { %v270_v44 = vpop.permute.xlu0 %269 }
 0x11e   : > { %v315_v45 = vadd.f32 %v314_v43, %v270_v44 }
 0x120   : > { %321 = vst.msk [vmem:[%s192_s26 + $0x18] sm:$0xff] %vm317_vm2, %v315_v45 }
 0x123   : > { %v266_v47 = vpop.permute.xlu1 %265 }
 0x124   : > { %v309_v48 = vadd.f32 %v308_v46, %v266_v47 }
 0x126   : > { %319 = vst.msk [vmem:[%s192_s26 + $0x8] sm:$0xff] %vm317_vm2, %v309_v48 }
 0x127 PF: > { %s15_s16 = sadd.s32 1, %s627_s16   ;;  %s802_s9 = smov %s603_s10 }
 0x128   : > { %p12_p2 = scmp.ge.s32.totalorder %s15_s16, 6   ;;  %s803_s10 = smov %s607_s11 }
 0x129   : > { %s804_s11 = smov %s716_s29  ;;  %s805_s12 = smov %s619_s14 }
 0x12a   : > { %s806_s13 = smov %s623_s15  ;;  %s807_s14 = smov %s810_s18 }
 0x12b   : > { %s808_s15 = smov %s814_s19  ;;  %14 = sbr.rel (!%p12_p2) target bundleno = 5 (0x5), region = 68 }
 0x130   :  { %352 = vsyncpa [#allocation3], 1 }
 0x131   :  { %354 = vsyncpa [#allocation3 + $0x1], 1 }

</bundles_post_ra>
